<compile_context>
chip_gen: v6e
topology: v6e:2x2x1
jax: 0.10.0
libtpu: 0.0.40
codegen_flags: <defaults>
</compile_context>

<pallas_src>
import math
from functools import partial

import jax
import jax.numpy as jnp
from jax import lax
from jax.experimental import pallas as pl
from jax.experimental.pallas import tpu as pltpu

LANE = 128      # lane axis width (multiple of 128)
MAX_TM = 1024   # max sublane rows per tile -> 512 KiB per f32 input tile


def _round_up(x, m):
    return ((x + m - 1) // m) * m


def _focal_weight_pow(x, gamma):
    """x**gamma using plain multiplies for small integer gamma (VPU only)."""
    g = float(gamma)
    if g == 0.0:
        return jnp.ones_like(x)
    if g == round(g) and 1 <= int(round(g)) <= 8:
        n = int(round(g))
        result, base = None, x
        while n:
            if n & 1:
                result = base if result is None else result * base
            n >>= 1
            if n:
                base = base * base
        return result
    return jnp.power(x, jnp.float32(g))


def _focal_elements(p, t, gamma, alpha):
    """Elementwise binary focal loss with logits (f32 in, f32 out).

    Reuses e = exp(-|p|) for both the numerically-stable BCE and the sigmoid,
    so only exp / log1p (and one divide) hit the EUP per element.
    """
    e = jnp.exp(-jnp.abs(p))
    bce = jnp.maximum(p, 0.0) - p * t + jnp.log1p(e)
    r = 1.0 / (1.0 + e)           # sigmoid(|p|)
    er = e * r                    # sigmoid(-|p|)
    pos = p >= 0.0
    sig = jnp.where(pos, r, er)
    one_minus_sig = jnp.where(pos, er, r)
    t_is_one = t == 1.0
    one_minus_pt = jnp.where(t_is_one, one_minus_sig, sig)
    fw = _focal_weight_pow(one_minus_pt, gamma)
    if alpha is not None:
        fw = fw * jnp.where(t_is_one, jnp.float32(alpha),
                            jnp.float32(1.0 - alpha))
    return fw * bce


def _ew_kernel(p_ref, t_ref, o_ref, *, gamma, alpha):
    p = p_ref[...].astype(jnp.float32)
    t = t_ref[...].astype(jnp.float32)
    o_ref[...] = _focal_elements(p, t, gamma, alpha).astype(o_ref.dtype)


def _reduce_kernel(p_ref, t_ref, o_ref, acc_ref, *, gamma, alpha,
                   tm, steps_per_core, full_rows, rem, need_mask):
    c = pl.program_id(0)   # TensorCore split ("parallel")
    j = pl.program_id(1)   # reduction steps ("arbitrary")

    @pl.when(j == 0)
    def _():
        acc_ref[...] = jnp.zeros_like(acc_ref)

    p = p_ref[...].astype(jnp.float32)
    t = t_ref[...].astype(jnp.float32)
    loss = _focal_elements(p, t, gamma, alpha)

    if need_mask:
        tile_row0 = (c * steps_per_core + j) * tm
        has_pad = tile_row0 + tm > full_rows   # scalar: tile touches padding?

        @pl.when(has_pad)
        def _():
            grow = tile_row0 + lax.broadcasted_iota(jnp.int32, (tm, LANE), 0)
            valid = grow < full_rows
            if rem:
                lane = lax.broadcasted_iota(jnp.int32, (tm, LANE), 1)
                valid = valid | ((grow == full_rows) & (lane < rem))
            acc_ref[...] += jnp.where(valid, loss, 0.0)

        @pl.when(jnp.logical_not(has_pad))
        def _():
            acc_ref[...] += loss
    else:
        acc_ref[...] += loss

    @pl.when(j == steps_per_core - 1)
    def _():
        o_ref[0] = acc_ref[...]   # per-core partial sums, lane-dense store


def _prepare_slab(x, padded_total):
    flat = x.reshape(-1)
    total = flat.shape[0]
    if padded_total != total:      # only pad when actually needed
        flat = jnp.pad(flat, (0, padded_total - total))
    return flat.reshape(padded_total // LANE, LANE)


def binary_focal_loss_with_logits(p, t, gamma=2.0, alpha=None,
                                  reduction="elementwise_mean"):
    if reduction not in ("none", "sum", "elementwise_mean"):
        raise ValueError(f"invalid reduction: {reduction}")

    orig_shape = p.shape
    out_dtype = p.dtype
    total = int(math.prod(orig_shape))

    itemsize = min(jnp.dtype(p.dtype).itemsize, jnp.dtype(t.dtype).itemsize)
    row_align = max(8, 32 // max(int(itemsize), 1))   # sublane tile alignment
    rows = pl.cdiv(total, LANE)
    rows_aligned = _round_up(max(rows, 1), row_align)
    tm = min(MAX_TM, rows_aligned)
    steps = pl.cdiv(rows_aligned, tm)

    if reduction == "none":
        padded_rows = steps * tm
        padded_total = padded_rows * LANE
        p2 = _prepare_slab(p, padded_total)
        t2 = _prepare_slab(t, padded_total)
        out = pl.pallas_call(
            partial(_ew_kernel, gamma=gamma, alpha=alpha),
            out_shape=jax.ShapeDtypeStruct((padded_rows, LANE), out_dtype),
            grid=(steps,),
            in_specs=[pl.BlockSpec((tm, LANE), lambda i: (i, 0)),
                      pl.BlockSpec((tm, LANE), lambda i: (i, 0))],
            out_specs=pl.BlockSpec((tm, LANE), lambda i: (i, 0)),
            compiler_params=pltpu.CompilerParams(
                dimension_semantics=("parallel",)),
        )(p2, t2)
        return out.reshape(-1)[:total].reshape(orig_shape)

    # --- 'sum' / 'elementwise_mean' path ---
    # Split the reduction over 2 TensorCores when there is enough work
    # (v7x megacore; on single-TC chips the extra axis is just a loop).
    if steps >= 2 and (steps % 2 == 0 or steps >= 8):
        ncores = 2
    else:
        ncores = 1
    steps_per_core = pl.cdiv(steps, ncores)
    padded_rows = ncores * steps_per_core * tm
    padded_total = padded_rows * LANE

    p2 = _prepare_slab(p, padded_total)
    t2 = _prepare_slab(t, padded_total)

    full_rows, rem = divmod(total, LANE)
    need_mask = padded_total != total

    partials = pl.pallas_call(
        partial(_reduce_kernel, gamma=gamma, alpha=alpha, tm=tm,
                steps_per_core=steps_per_core, full_rows=full_rows,
                rem=rem, need_mask=need_mask),
        out_shape=jax.ShapeDtypeStruct((ncores, tm, LANE), jnp.float32),
        grid_spec=pltpu.PrefetchScalarGridSpec(
            num_scalar_prefetch=0,
            grid=(ncores, steps_per_core),
            in_specs=[
                pl.BlockSpec((tm, LANE),
                             lambda c, j: (c * steps_per_core + j, 0)),
                pl.BlockSpec((tm, LANE),
                             lambda c, j: (c * steps_per_core + j, 0)),
            ],
            out_specs=pl.BlockSpec((1, tm, LANE), lambda c, j: (c, 0, 0)),
            scratch_shapes=[pltpu.VMEM((tm, LANE), jnp.float32)],
        ),
        compiler_params=pltpu.CompilerParams(
            dimension_semantics=("parallel", "arbitrary")),
    )(p2, t2)

    result = jnp.sum(partials)   # tiny final reduce of per-core vreg partials
    if reduction == "elementwise_mean":
        result = result / jnp.float32(total)
    return result.astype(out_dtype)


class BinaryFocalLossWithLogits:
    """JAX/Pallas port of dlutils BinaryFocalLossWithLogits (no parameters)."""

    def __init__(self, alpha=None, gamma=2, reduction="elementwise_mean"):
        self.alpha = alpha
        self.gamma = gamma
        self.reduction = reduction

    def __call__(self, p, t):
        return binary_focal_loss_with_logits(
            p, t, gamma=self.gamma, alpha=self.alpha, reduction=self.reduction)


def _reference(p, t, gamma, alpha, reduction):
    """Pure-JAX mirror of the PyTorch module."""
    p = p.astype(jnp.float32)
    t = t.astype(jnp.float32)
    bce = jnp.maximum(p, 0.0) - p * t + jnp.log1p(jnp.exp(-jnp.abs(p)))
    sig = jax.nn.sigmoid(p)
    fw = jnp.power(1.0 - jnp.where(t == 1.0, sig, 1.0 - sig),
                   jnp.float32(gamma))
    if alpha is not None:
        fw = fw * jnp.where(t == 1.0, jnp.float32(alpha),
                            jnp.float32(1.0 - alpha))
    loss = fw * bce
    if reduction == "elementwise_mean":
        return jnp.mean(loss)
    if reduction == "sum":
        return jnp.sum(loss)
    return loss


if __name__ == "__main__":
    key = jax.random.PRNGKey(0)
    kp, kt = jax.random.split(key)

    # layout: NCHW logits/targets, flattened to a (rows, 128) slab internally
    shape = (2, 4, 16, 16)
    logits = jax.random.normal(kp, shape, dtype=jnp.float32)
    targets = jax.random.bernoulli(kt, 0.5, shape).astype(jnp.float32)

    # mean reduction with alpha
    module = BinaryFocalLossWithLogits(alpha=0.25, gamma=2.0,
                                       reduction="elementwise_mean")
    loss = module(logits, targets)
    jax.block_until_ready(loss)
    ref = _reference(logits, targets, gamma=2.0, alpha=0.25,
                     reduction="elementwise_mean")
    assert jnp.allclose(loss, ref, rtol=1e-4, atol=1e-6), (loss, ref)

    # elementwise ('none') path, no alpha
    loss_none = BinaryFocalLossWithLogits(alpha=None, gamma=2.0,
                                          reduction="none")(logits, targets)
    jax.block_until_ready(loss_none)
    ref_none = _reference(logits, targets, gamma=2.0, alpha=None,
                          reduction="none")
    assert loss_none.shape == shape
    assert jnp.allclose(loss_none, ref_none, rtol=1e-4, atol=1e-6)

    # 'sum' path with a shape that needs lane/row padding + masking
    kp2, kt2 = jax.random.split(jax.random.PRNGKey(1))
    shape2 = (3, 5, 7)
    lg2 = jax.random.normal(kp2, shape2, dtype=jnp.float32)
    tg2 = jax.random.bernoulli(kt2, 0.5, shape2).astype(jnp.float32)
    s = BinaryFocalLossWithLogits(alpha=0.75, gamma=2.0,
                                  reduction="sum")(lg2, tg2)
    jax.block_until_ready(s)
    s_ref = _reference(lg2, tg2, gamma=2.0, alpha=0.75, reduction="sum")
    assert jnp.allclose(s, s_ref, rtol=1e-4, atol=1e-6), (s, s_ref)

    # mean path exercising the 2-core grid split + masked trailing tile
    kp3, kt3 = jax.random.split(jax.random.PRNGKey(2))
    shape3 = (2, 4, 160, 160)
    lg3 = jax.random.normal(kp3, shape3, dtype=jnp.float32)
    tg3 = jax.random.bernoulli(kt3, 0.5, shape3).astype(jnp.float32)
    m3 = BinaryFocalLossWithLogits(alpha=0.25, gamma=2.0,
                                   reduction="elementwise_mean")(lg3, tg3)
    jax.block_until_ready(m3)
    m3_ref = _reference(lg3, tg3, gamma=2.0, alpha=0.25,
                        reduction="elementwise_mean")
    assert jnp.allclose(m3, m3_ref, rtol=1e-4, atol=1e-6), (m3, m3_ref)

    print("KERNEL_OK")
</pallas_src>

<mosaic_0001>
module attributes {stable_mosaic.version = 11 : i64} {
  func.func @_reduce_kernel(%arg0: i32, %arg1: i32, %arg2: memref<16x128xf32, #tpu.memory_space<vmem>>, %arg3: memref<16x128xf32, #tpu.memory_space<vmem>>, %arg4: memref<1x16x128xf32, #tpu.memory_space<vmem>>, %arg5: memref<16x128xf32, #tpu.memory_space<vmem>>) attributes {dimension_semantics = [#tpu.dimension_semantics<parallel>, #tpu.dimension_semantics<arbitrary>], iteration_bounds = array<i64: 1, 1>, scalar_prefetch = 0 : i64, scratch_operands = 1 : i64, tpu.core_type = #tpu.core_type<tc>, window_params = [{transform_indices = @transform_0, window_bounds = array<i64: 16, 128>}, {transform_indices = @transform_1, window_bounds = array<i64: 16, 128>}, {transform_indices = @transform_2, window_bounds = array<i64: 1, 16, 128>}]} {
    %c0_i32 = arith.constant 0 : i32
    %0 = arith.cmpi eq, %arg1, %c0_i32 : i32
    %1 = arith.extui %0 : i1 to i32
    %c0_i32_0 = arith.constant 0 : i32
    %2 = arith.cmpi ne, %1, %c0_i32_0 : i32
    scf.if %2 {
      %cst_17 = arith.constant 0.000000e+00 : f32
      %39 = vector.broadcast %cst_17 : f32 to vector<16x128xf32>
      %c0_18 = arith.constant 0 : index
      %c0_19 = arith.constant 0 : index
      %40 = vector.load %arg5[%c0_18, %c0_19] : memref<16x128xf32, #tpu.memory_space<vmem>>, vector<16x128xf32>
      tpu.vector_store %arg5[%c0_18, %c0_19], %39 {strides = array<i32>} : memref<16x128xf32, #tpu.memory_space<vmem>>, vector<16x128xf32>,
    } else {
    }
    %c0 = arith.constant 0 : index
    %c0_1 = arith.constant 0 : index
    %3 = vector.load %arg2[%c0, %c0_1] : memref<16x128xf32, #tpu.memory_space<vmem>>, vector<16x128xf32>
    %c0_2 = arith.constant 0 : index
    %c0_3 = arith.constant 0 : index
    %4 = vector.load %arg3[%c0_2, %c0_3] : memref<16x128xf32, #tpu.memory_space<vmem>>, vector<16x128xf32>
    %5 = math.absf %3 : vector<16x128xf32>
    %cst = arith.constant 0.000000e+00 : f32
    %6 = vector.broadcast %cst : f32 to vector<16x128xf32>
    %7 = arith.subf %6, %5 : vector<16x128xf32>
    %8 = math.exp %7 : vector<16x128xf32>
    %cst_4 = arith.constant 0.000000e+00 : f32
    %9 = vector.broadcast %cst_4 : f32 to vector<16x128xf32>
    %10 = arith.maximumf %3, %9 : vector<16x128xf32>
    %11 = arith.mulf %3, %4 : vector<16x128xf32>
    %12 = arith.subf %10, %11 : vector<16x128xf32>
    %13 = math.log1p %8 : vector<16x128xf32>
    %14 = arith.addf %12, %13 : vector<16x128xf32>
    %cst_5 = arith.constant 1.000000e+00 : f32
    %15 = vector.broadcast %cst_5 : f32 to vector<16x128xf32>
    %16 = arith.addf %15, %8 : vector<16x128xf32>
    %cst_6 = arith.constant 1.000000e+00 : f32
    %17 = vector.broadcast %cst_6 : f32 to vector<16x128xf32>
    %18 = arith.divf %17, %16 : vector<16x128xf32>
    %19 = arith.mulf %8, %18 : vector<16x128xf32>
    %cst_7 = arith.constant 0.000000e+00 : f32
    %20 = vector.broadcast %cst_7 : f32 to vector<16x128xf32>
    %21 = arith.cmpf oge, %3, %20 : vector<16x128xf32>
    %22 = arith.select %21, %18, %19 : vector<16x128xi1>, vector<16x128xf32>
    %23 = arith.select %21, %19, %18 : vector<16x128xi1>, vector<16x128xf32>
    %cst_8 = arith.constant 1.000000e+00 : f32
    %24 = vector.broadcast %cst_8 : f32 to vector<16x128xf32>
    %25 = arith.cmpf oeq, %4, %24 : vector<16x128xf32>
    %26 = arith.select %25, %23, %22 : vector<16x128xi1>, vector<16x128xf32>
    %27 = arith.mulf %26, %26 : vector<16x128xf32>
    %cst_9 = arith.constant 2.500000e-01 : f32
    %cst_10 = arith.constant 7.500000e-01 : f32
    %28 = vector.broadcast %cst_9 : f32 to vector<16x128xf32>
    %29 = vector.broadcast %cst_10 : f32 to vector<16x128xf32>
    %30 = arith.select %25, %28, %29 : vector<16x128xi1>, vector<16x128xf32>
    %31 = arith.mulf %27, %30 : vector<16x128xf32>
    %32 = arith.mulf %31, %14 : vector<16x128xf32>
    %c0_11 = arith.constant 0 : index
    %c0_12 = arith.constant 0 : index
    %33 = vector.load %arg5[%c0_11, %c0_12] : memref<16x128xf32, #tpu.memory_space<vmem>>, vector<16x128xf32>
    %34 = arith.addf %33, %32 : vector<16x128xf32>
    %c0_13 = arith.constant 0 : index
    %c0_14 = arith.constant 0 : index
    %35 = vector.load %arg5[%c0_13, %c0_14] : memref<16x128xf32, #tpu.memory_space<vmem>>, vector<16x128xf32>
    tpu.vector_store %arg5[%c0_13, %c0_14], %34 {strides = array<i32>} : memref<16x128xf32, #tpu.memory_space<vmem>>, vector<16x128xf32>,
    %c0_i32_15 = arith.constant 0 : i32
    %36 = arith.cmpi eq, %arg1, %c0_i32_15 : i32
    %37 = arith.extui %36 : i1 to i32
    %c0_i32_16 = arith.constant 0 : i32
    %38 = arith.cmpi ne, %37, %c0_i32_16 : i32
    scf.if %38 {
      %c0_17 = arith.constant 0 : index
      %c0_18 = arith.constant 0 : index
      %39 = vector.load %arg5[%c0_17, %c0_18] : memref<16x128xf32, #tpu.memory_space<vmem>>, vector<16x128xf32>
      %c0_19 = arith.constant 0 : index
      %c0_20 = arith.constant 0 : index
      %c0_21 = arith.constant 0 : index
      %40 = vector.load %arg4[%c0_19, %c0_20, %c0_21] : memref<1x16x128xf32, #tpu.memory_space<vmem>>, vector<1x16x128xf32>
      %41 = vector.shape_cast %40 : vector<1x16x128xf32> to vector<16x128xf32>
      %42 = vector.shape_cast %39 : vector<16x128xf32> to vector<1x16x128xf32>
      tpu.vector_store %arg4[%c0_19, %c0_20, %c0_21], %42 {strides = array<i32>} : memref<1x16x128xf32, #tpu.memory_space<vmem>>, vector<1x16x128xf32>,
    } else {
    }
    return
  }
  func.func @transform_0(%arg0: i32, %arg1: i32) -> (i32, i32) {
    %c1_i32 = arith.constant 1 : i32
    %0 = arith.muli %arg0, %c1_i32 : i32
    %1 = arith.addi %0, %arg1 : i32
    %c0_i32 = arith.constant 0 : i32
    %c0_i32_0 = arith.constant 0 : i32
    return %1, %c0_i32 : i32, i32
  }
  func.func @transform_1(%arg0: i32, %arg1: i32) -> (i32, i32) {
    %c1_i32 = arith.constant 1 : i32
    %0 = arith.muli %arg0, %c1_i32 : i32
    %1 = arith.addi %0, %arg1 : i32
    %c0_i32 = arith.constant 0 : i32
    %c0_i32_0 = arith.constant 0 : i32
    return %1, %c0_i32 : i32, i32
  }
  func.func @transform_2(%arg0: i32, %arg1: i32) -> (i32, i32, i32) {
    %c0_i32 = arith.constant 0 : i32
    %c0_i32_0 = arith.constant 0 : i32
    %c0_i32_1 = arith.constant 0 : i32
    return %arg0, %c0_i32, %c0_i32_0 : i32, i32, i32
  }
}

</mosaic_0001>

<bundles_post_ra>
// kernel: tpu_custom_call.1
= control target key start
LH: loop header
LB: loop body
LE: loop exit
PB: predicated region body
PF: predicated region fallthrough
CT: control target
= control target key end

     0   :  { %7 = vsyncpa [#allocation4], 0  ;;  %s288_s0 = inlined_call_operand.hbm [shape: f32[16,128], index: 0, kind: input, shape index: {}]   ;;  %s289_s1 = inlined_call_operand.hbm [shape: f32[16,128], index: 1, kind: input, shape index: {}]   ;;  %s290_s2 = inlined_call_operand.hbm [shape: f32[1,16,128], index: 2, kind: output, shape index: {}]  }
   0x1   :  { %8 = vsyncpa [#allocation7], 0 }
   0x2   :  { %9 = vsyncpa [#allocation5], 0  ;;  %s237_s9 = smov [#allocation3]  }
   0x3   :  { %s19_s10 = sshll.u32 %s237_s9, 4  ;;  %s20_s10 = int_to_ptr.vmem [resolvable:$true] %s19_s10 }
   0x4   :  { %s179_s11 = scalar_lea.vmem %s20_s10, 256  ;;  %p184_p1 = scmp.lt.s32.totalorder %s20_s10, %s20_s10 }
   0x5   :  { %p180_p0 = scmp.ne.s32.totalorder %s20_s10, %s179_s11  ;;  %p185_p2 = scmp.lt.s32.totalorder %s179_s11, %s179_s11 }
   0x7   :  { %p186_p3 = por %p185_p2, %p184_p1 }
   0x9   :  { %p187_p4 = pnand %p186_p3, %p180_p0 }
   0xb   :  { %190 = shalt.err (!%p187_p4)
}
   0xc   :  { %s238_s12 = smov 128   ;;  %s239_s13 = smov 8  }
   0xd   :  { %25 = dma.hbm_to_vmem [thread:$0]  %s288_s0, 256, %s20_s10, [#allocation4], %s238_s12, %s238_s12, %s239_s13  }
   0xe   :  { %s240_s16 = smov [#allocation6]  }
   0xf   :  { %s35_s17 = sshll.u32 %s240_s16, 4  ;;  %s36_s17 = int_to_ptr.vmem [resolvable:$true] %s35_s17 }
  0x10   :  { %s199_s18 = scalar_lea.vmem %s36_s17, 256  ;;  %p204_p6 = scmp.lt.s32.totalorder %s36_s17, %s36_s17 }
  0x11   :  { %p200_p5 = scmp.ne.s32.totalorder %s36_s17, %s199_s18  ;;  %p205_p7 = scmp.lt.s32.totalorder %s199_s18, %s199_s18 }
  0x13   :  { %p206_p8 = por %p205_p7, %p204_p6 }
  0x15   :  { %p207_p9 = pnand %p206_p8, %p200_p5 }
  0x17   :  { %210 = shalt.err (!%p207_p9)
}
  0x18   :  { %41 = dma.hbm_to_vmem [thread:$0]  %s289_s1, 256, %s36_s17, [#allocation7], %s238_s12, %s238_s12, %s239_s13  }
  0x19   :  { %231 = dma.done.wait [#allocation4], 256  }
  0x1a   :  { %232 = vsyncadd [#allocation4], 4294967040 }
  0x1b   :  { %233 = dma.done.wait [#allocation7], 256  }
  0x1c   :  { %234 = vsyncadd [#allocation7], 4294967040  ;;  %v58_v0 = vld [vmem:[#allocation3] sm:$0xff]  ;;  %v59_v1 = vld [vmem:[#allocation3 + $0x8] sm:$0xff]  ;;  %v241_v42 = vmov 0.75   ;;  %s242_s0 = smov [#allocation8]  }
  0x1d   :  { %v62_v2 = vand.u32 2147483647, %v58_v0  ;;  %v63_v3 = vand.u32 2147483647, %v59_v1  ;;  %v60_v14 = vld [vmem:[#allocation6] sm:$0xff]  ;;  %v61_v17 = vld [vmem:[#allocation6 + $0x8] sm:$0xff] }
  0x1e   :  { %v70_v19 = vmax.f32 %v58_v0, 0.0  ;;  %v72_v20 = vmul.f32 %v60_v14, %v58_v0  ;;  %v71_v23 = vmax.f32 %v59_v1, 0.0  ;;  %v73_v24 = vmul.f32 %v61_v17, %v59_v1  ;;  %s140_s1 = sshll.u32 %s242_s0, 4  ;;  %s141_s1 = int_to_ptr.vmem [resolvable:$true] %s140_s1 }
  0x1f   :  { %v64_v4 = vsub.f32 0.0, %v62_v2  ;;  %v65_v5 = vsub.f32 0.0, %v63_v3  ;;  %vm104_vm1 = vcmp.ge.f32.partialorder %v58_v0, 0.0  ;;  %vm110_vm2 = vcmp.eq.f32.partialorder %v60_v14, 1.0  ;;  %s211_s21 = scalar_lea.vmem %s141_s1, 256  ;;  %p216_p11 = scmp.lt.s32.totalorder %s141_s1, %s141_s1 }
  0x20   :  { %v74_v31 = vsub.f32 %v70_v19, %v72_v20  ;;  %v75_v36 = vsub.f32 %v71_v23, %v73_v24  ;;  %vm105_vm4 = vcmp.ge.f32.partialorder %v59_v1, 0.0  ;;  %vm111_vm5 = vcmp.eq.f32.partialorder %v61_v17, 1.0  ;;  %p212_p10 = scmp.ne.s32.totalorder %s141_s1, %s211_s21  ;;  %p217_p12 = scmp.lt.s32.totalorder %s211_s21, %s211_s21 }
  0x21   :  { %v66_v6 = vmul.f32 1.442695, %v64_v4  ;;  %v68_v7 = vmul.f32 1.442695, %v65_v5  ;;  %v116_v43 = vsel %vm110_vm2, 0.25, %v241_v42  ;;  %v117_v50 = vsel %vm111_vm5, 0.25, %v241_v42 }
  0x22   :  { %p218_p13 = por %p217_p12, %p216_p11 }
  0x23   :  { %159 = vpow2.f32 %v66_v6 }
  0x24   :  { %161 = vpow2.f32 %v68_v7  ;;  %p219_p0 = pnand %p218_p13, %p212_p10 }
  0x30   :  { %v160_v8 = vpop.eup %159 }
  0x31   :  { %v162_v9 = vpop.eup %161  ;;  %v76_v10 = vadd.f32 1.0, %v160_v8  ;;  %v79_v12 = vmul.f32 -0.5, %v160_v8  ;;  %v82_v16 = vand.u32 2147483647, %v160_v8 }
  0x32   :  { %v85_v11 = vadd.f32 1.0, %v162_v9  ;;  %v88_v13 = vmul.f32 -0.5, %v162_v9  ;;  %v91_v21 = vand.u32 2147483647, %v162_v9 }
  0x33   :  { %163 = vlog2.f32 %v76_v10  ;;  %v80_v15 = vadd.f32 1.0, %v79_v12  ;;  %vm270_vm0 = vcmp.lt.f32.partialorder %v82_v16, 0.0004427343 }
  0x34   :  { %165 = vrcp.f32 %v76_v10  ;;  %v89_v18 = vadd.f32 1.0, %v88_v13  ;;  %vm274_vm3 = vcmp.lt.f32.partialorder %v91_v21, 0.0004427343 }
  0x35   :  { %167 = vlog2.f32 %v85_v11  ;;  %v81_v22 = vmul.f32 %v160_v8, %v80_v15 }
  0x36   :  { %169 = vrcp.f32 %v85_v11  ;;  %v90_v29 = vmul.f32 %v162_v9, %v89_v18 }
  0x40   :  { %v164_v25 = vpop.eup %163 }
  0x41   :  { %v166_v27 = vpop.eup %165  ;;  %v78_v28 = vmul.f32 0.6931472, %v164_v25 }
  0x42   :  { %v168_v30 = vpop.eup %167  ;;  %v102_v32 = vmul.f32 %v166_v27, %v160_v8 }
  0x43   :  { %v170_v34 = vpop.eup %169  ;;  %v84_v35 = vsel %vm270_vm0, %v81_v22, %v78_v28  ;;  %v87_v37 = vmul.f32 0.6931472, %v168_v30 }
  0x44   :  { %v106_v38 = vsel %vm104_vm1, %v166_v27, %v102_v32  ;;  %v108_v39 = vsel %vm104_vm1, %v102_v32, %v166_v27  ;;  %v103_v40 = vmul.f32 %v170_v34, %v162_v9  ;;  %v94_v45 = vadd.f32 %v84_v35, %v74_v31 }
  0x45   :  { %v112_v41 = vsel %vm110_vm2, %v108_v39, %v106_v38  ;;  %v93_v44 = vsel %vm274_vm3, %v90_v29, %v87_v37 }
  0x46   :  { %v114_v46 = vmul.f32 %v112_v41, %v112_v41  ;;  %v107_v47 = vsel %vm105_vm4, %v170_v34, %v103_v40  ;;  %v109_v48 = vsel %vm105_vm4, %v103_v40, %v170_v34  ;;  %v95_v52 = vadd.f32 %v93_v44, %v75_v36 }
  0x47   :  { %v113_v49 = vsel %vm111_vm5, %v109_v48, %v107_v47 }
  0x48   :  { %v118_v51 = vmul.f32 %v116_v43, %v114_v46  ;;  %v115_v53 = vmul.f32 %v113_v49, %v113_v49 }
  0x4a   :  { %v120_v54 = vmul.f32 %v118_v51, %v94_v45  ;;  %v119_v55 = vmul.f32 %v117_v50, %v115_v53 }
  0x4c   :  { %133 = vst [vmem:[#allocation8] sm:$0xff] %v120_v54  ;;  %v121_v56 = vmul.f32 %v119_v55, %v95_v52 }
  0x4e   :  { %134 = vst [vmem:[#allocation8 + $0x8] sm:$0xff] %v121_v56 }
  0x4f   :  { %222 = shalt.err (!%p219_p0)
}
  0x50   :  { %146 = dma.vmem_to_hbm [thread:$0]  %s141_s1, 256, %s290_s2, [#allocation5], %s238_s12, %s238_s12, %s239_s13  }
  0x51   :  { %235 = dma.done.wait [#allocation5], 256  }
  0x52   :  { %236 = vsyncadd [#allocation5], 4294967040 }
  0x53   :  { %150 = vsyncpa [#allocation4], 1 }
  0x54   :  { %151 = vsyncpa [#allocation7], 1 }
  0x55   :  { %152 = vsyncpa [#allocation5], 1 }

</bundles_post_ra>
